<compile_context>
chip_gen: v7x
topology: tpu7x:2x2x1
jax: 0.10.0
libtpu: 0.0.40
codegen_flags: <defaults>
</compile_context>

<pallas_src>
import math

import jax
import jax.numpy as jnp
import numpy as np
from jax.experimental import pallas as pl
from jax.experimental.pallas import tpu as pltpu

# ---------------- config (deterministic, mirrors config.* fields) -----------
FOCAL_ALPHA = 0.25
FOCAL_GAMMA = 2.0
TRIPLET_MARGIN = 0.3
LOSS_WEIGHTS = {
    "bce": 1.0,
    "focal": 0.5,
    "triplet": 0.3,
    "sa_weight": 0.2,
    "glca_weight": 0.2,
    "pwca_weight": 0.2,
}

_VMEM_SPEC = pl.BlockSpec(memory_space=pltpu.MemorySpace.VMEM)

# lane layout of the packed output vector
_LANE_BCE, _LANE_FOCAL, _LANE_TRIP = 0, 1, 2
_LANE_SA, _LANE_GLCA, _LANE_PWCA = 3, 4, 5
_LANE_REG, _LANE_TOTAL = 6, 7
_OUT_LANES = 128  # lane-dense, unmasked store


def _bce_with_logits(x, t):
    # numerically-stable binary_cross_entropy_with_logits (elementwise)
    return jnp.maximum(x, 0.0) - x * t + jnp.log1p(jnp.exp(-jnp.abs(x)))


def _pick_vmem_limit(working_set_bytes):
    """Scoped-VMEM limit from the actual working set, clamped per generation.

    v5e/v6e have 128 MiB physical VMEM (32 MiB scoped default); v7x only
    64 MiB.  We raise the limit only as far as the shapes require and never
    above ~90% of the chip's physical capacity.
    """
    try:
        cap = int(pltpu.get_tpu_info().vmem_capacity_bytes)
    except Exception:  # pragma: no cover - conservative fallback (v7x floor)
        cap = 64 * 1024 * 1024
    want = 2 * int(working_set_bytes) + (8 << 20)  # headroom for compiler tmp
    return int(min(max(32 << 20, want), int(cap * 0.9)))


# ---------------- single fused kernel ----------------------------------------
def combined_loss_kernel(pred_ref, trow_ref, tcol_ref,
                         c1_ref, c2_ref,
                         sa1_ref, sa2_ref,
                         glca1_ref, glca2_ref,
                         pwca1_ref, pwca2_ref,
                         cls_ref,
                         out_ref):
    f32 = jnp.float32
    x = pred_ref[...]           # [1, B]  verification logits (f32)
    t_row = trow_ref[...]       # [1, B]  binary targets (row layout, f32)
    t_col = tcol_ref[...]       # [B, 1]  binary targets (column layout, f32)

    # ---- BCE + focal on verification logits --------------------------------
    bce_e = _bce_with_logits(x, t_row)
    bce_l = jnp.mean(bce_e)
    p = jax.nn.sigmoid(x)
    p_t = p * t_row + (1.0 - p) * (1.0 - t_row)
    alpha_t = FOCAL_ALPHA * t_row + (1.0 - FOCAL_ALPHA) * (1.0 - t_row)
    one_minus_pt = 1.0 - p_t
    if float(FOCAL_GAMMA) == 2.0:
        modulator = one_minus_pt * one_minus_pt
    else:
        modulator = jnp.power(one_minus_pt, FOCAL_GAMMA)
    focal_l = jnp.mean(alpha_t * modulator * bce_e)

    # ---- hard-mining triplet loss on concatenated combined_features --------
    # Native-dtype concat feeds the MXU directly (bf16 OK on all generations);
    # the f32 copy is used only for the cheap [2B, D] squared-norm VPU work
    # (v5e has no bf16 VPU/EUP arithmetic).
    e = jnp.concatenate([c1_ref[...], c2_ref[...]], axis=0)      # [2B, D]
    e32 = e.astype(f32)
    n = e.shape[0]
    # contraction on the last dim of both operands -> MXU, no e.T materialized
    gram = jax.lax.dot_general(
        e, e, (((1,), (1,)), ((), ())),
        preferred_element_type=jnp.float32)                      # [2B, 2B]

    # squared norms: column layout directly from e ([2B, D] work), row layout
    # from a single gram-diagonal select + reduce (one N^2 op instead of two).
    sq_col = jnp.sum(e32 * e32, axis=1, keepdims=True)           # [2B, 1]
    row = jax.lax.broadcasted_iota(jnp.int32, (n, n), 0)
    col = jax.lax.broadcasted_iota(jnp.int32, (n, n), 1)
    diag = row == col                                            # bool [2B,2B]
    sq_row = jnp.sum(jnp.where(diag, gram, 0.0),
                     axis=0, keepdims=True)                      # [1, 2B]

    d2 = sq_row - 2.0 * gram + sq_col
    dist = jnp.sqrt(jnp.maximum(d2, 0.0) + 1e-12)

    lab_col = jnp.concatenate([t_col, t_col], axis=0)            # [2B, 1]
    lab_row = jnp.concatenate([t_row, t_row], axis=1)            # [1, 2B]
    # float == on hard 0/1 targets (consistent with the PyTorch reference)
    same = lab_col == lab_row                                    # bool [2B,2B]
    pos_valid = jnp.logical_and(same, jnp.logical_not(diag))
    # hardest_pos is 0 for rows with no positive pair (matches reference)
    hardest_pos = jnp.max(jnp.where(pos_valid, dist, 0.0),
                          axis=1, keepdims=True)
    # +1e6 on same-label entries (incl. diagonal) == reference masking
    hardest_neg = jnp.min(jnp.where(same, dist + 1e6, dist),
                          axis=1, keepdims=True)
    trip_l = jnp.mean(jnp.maximum(hardest_pos - hardest_neg + TRIPLET_MARGIN,
                                  0.0))

    # ---- branch cosine-similarity BCE losses (sa / glca / pwca) -------------
    def branch_loss(a_ref, b_ref):
        a = a_ref[...].astype(f32)
        b = b_ref[...].astype(f32)
        dotp = jnp.sum(a * b, axis=1, keepdims=True)             # [B, 1]
        na2 = jnp.sum(a * a, axis=1, keepdims=True)
        nb2 = jnp.sum(b * b, axis=1, keepdims=True)
        # one rsqrt (EUP slot) instead of 2x sqrt + divide
        sim = dotp * jax.lax.rsqrt(jnp.maximum(na2 * nb2, 1e-16))
        return jnp.mean(_bce_with_logits(sim, t_col))

    sa_l = branch_loss(sa1_ref, sa2_ref)
    glca_l = branch_loss(glca1_ref, glca2_ref)
    pwca_l = branch_loss(pwca1_ref, pwca2_ref)

    # ---- attention-entropy regularization (CLS row only) --------------------
    cls = cls_ref[...].astype(f32)                               # [B, S]
    s_len = cls.shape[1]
    lane = jax.lax.broadcasted_iota(jnp.int32, cls.shape, 1)
    # drop the CLS->CLS lane (index 0), matching rollout[:, 0, 1:]
    ent_terms = jnp.where(lane >= 1, cls * jnp.log(cls + 1e-8), 0.0)
    ent = -jnp.sum(ent_terms, axis=1, keepdims=True)             # [B, 1]
    target_entropy = math.log(s_len - 1)
    reg_l = jnp.mean(jnp.maximum(0.5 * target_entropy - ent, 0.0))

    # ---- total (epoch < 10 -> adaptive weights == config weights) -----------
    w = LOSS_WEIGHTS
    total = (w["bce"] * bce_l + w["focal"] * focal_l + w["triplet"] * trip_l
             + w["sa_weight"] * sa_l + w["glca_weight"] * glca_l
             + w["pwca_weight"] * pwca_l)
    total = total + jnp.where(reg_l > 0.0, 0.01 * reg_l, 0.0)

    # ---- single lane-dense packed store --------------------------------------
    lanes = jax.lax.broadcasted_iota(jnp.int32, (1, _OUT_LANES), 1)
    packed = jnp.zeros((1, _OUT_LANES), f32)
    for lane_idx, val in ((_LANE_BCE, bce_l), (_LANE_FOCAL, focal_l),
                          (_LANE_TRIP, trip_l), (_LANE_SA, sa_l),
                          (_LANE_GLCA, glca_l), (_LANE_PWCA, pwca_l),
                          (_LANE_REG, reg_l), (_LANE_TOTAL, total)):
        packed = jnp.where(lanes == lane_idx, val, packed)
    out_ref[...] = packed


# ---------------- wrapper -----------------------------------------------------
@jax.jit
def combined_loss(verification_score, targets,
                  combined1, combined2,
                  sa1, sa2, glca1, glca2, pwca1, pwca2,
                  attention_rollout):
    f32 = jnp.float32
    B = targets.shape[0]
    D = combined1.shape[1]
    S = attention_rollout.shape[1]
    N = 2 * B

    pred_row = verification_score.reshape(1, -1).astype(f32)    # [1, B]
    t_row = targets.reshape(1, -1).astype(f32)                  # [1, B]
    t_col = targets.reshape(-1, 1).astype(f32)                  # [B, 1]

    # Only the CLS row of the rollout is ever read by the loss: slice it here
    # so the kernel DMAs [B, S] instead of [B, S, S] (S x fewer HBM bytes).
    cls_row = attention_rollout[:, 0, :]                        # [B, S]

    # Feature arrays are passed in their native dtype (no wrapper f32 casts /
    # HBM temporaries); bf16 feeds the Gram MXU directly, f32 casts happen
    # in-kernel only where elementwise work needs them.
    feats = (combined1, combined2, sa1, sa2, glca1, glca2, pwca1, pwca2)

    # working-set estimate: inputs + ~8 live [2B,2B] f32 temporaries
    feat_bytes = sum(int(a.size) * a.dtype.itemsize for a in feats)
    cls_bytes = int(cls_row.size) * cls_row.dtype.itemsize
    small_bytes = 3 * B * 4 + 4 * _OUT_LANES
    nn_bytes = 8 * N * N * 4
    vmem_limit = _pick_vmem_limit(feat_bytes + cls_bytes + small_bytes
                                  + nn_bytes)

    # advisory cost estimate (shapes are static -> plain Python ints)
    flops = (2 * N * N * D            # triplet Gram matmul
             + 8 * N * N              # dist / mask selects / reductions
             + 4 * N * D              # squared norms + cast
             + 6 * 3 * B * D          # branch dots / norms
             + 4 * B * S              # entropy
             + 20 * B)                # bce / focal
    transcendentals = (N * N          # sqrt of distance matrix
                       + 3 * B        # branch rsqrt
                       + 8 * B        # sigmoid / exp / log1p
                       + B * S)       # entropy log
    bytes_accessed = (small_bytes + feat_bytes + cls_bytes)

    out = pl.pallas_call(
        combined_loss_kernel,
        in_specs=[_VMEM_SPEC] * 12,
        out_specs=_VMEM_SPEC,
        out_shape=jax.ShapeDtypeStruct((1, _OUT_LANES), jnp.float32),
        compiler_params=pltpu.CompilerParams(vmem_limit_bytes=vmem_limit),
        cost_estimate=pl.CostEstimate(
            flops=flops, transcendentals=transcendentals,
            bytes_accessed=bytes_accessed),
    )(pred_row, t_row, t_col,
      combined1, combined2,
      sa1, sa2, glca1, glca2, pwca1, pwca2,
      cls_row)

    bce_l = out[0, _LANE_BCE]
    focal_l = out[0, _LANE_FOCAL]
    trip_l = out[0, _LANE_TRIP]
    sa_l = out[0, _LANE_SA]
    glca_l = out[0, _LANE_GLCA]
    pwca_l = out[0, _LANE_PWCA]
    reg_l = out[0, _LANE_REG]
    total = out[0, _LANE_TOTAL]

    stats = {
        "bce_loss": bce_l,
        "focal_focal_loss": focal_l,
        "triplet_triplet_loss": trip_l,
        "sa_loss": sa_l,
        "glca_loss": glca_l,
        "pwca_loss": pwca_l,
        "regularization_loss": reg_l,
        "total_loss": total,
    }
    return total, stats


# ---------------- pure-JAX reference (for a sanity check) --------------------
def reference_total(pred, tgt, emb1, emb2, sa1, sa2, glca1, glca2,
                    pwca1, pwca2, rollout):
    x = pred.reshape(-1).astype(jnp.float32)
    t = tgt.reshape(-1).astype(jnp.float32)
    bce_e = _bce_with_logits(x, t)
    bce = bce_e.mean()
    p = jax.nn.sigmoid(x)
    p_t = p * t + (1 - p) * (1 - t)
    a_t = FOCAL_ALPHA * t + (1 - FOCAL_ALPHA) * (1 - t)
    focal = (a_t * (1 - p_t) ** 2 * bce_e).mean()

    e = jnp.concatenate([emb1, emb2], 0).astype(jnp.float32)
    l = jnp.concatenate([t, t], 0)[:, None]
    dot = e @ e.T
    sqn = jnp.sum(e * e, axis=1)
    d = jnp.sqrt(jnp.maximum(sqn[None, :] - 2 * dot + sqn[:, None], 0.0) + 1e-12)
    same = (l == l.T).astype(jnp.float32)
    eye = jnp.eye(e.shape[0], dtype=jnp.float32)
    hp = (d * (same - eye)).max(1)
    hn = (d + 1e6 * same).min(1)
    trip = jnp.maximum(hp - hn + TRIPLET_MARGIN, 0.0).mean()

    def branch(a, b):
        sim = jnp.sum(a * b, 1) / (jnp.maximum(jnp.linalg.norm(a, axis=1), 1e-8)
                                   * jnp.maximum(jnp.linalg.norm(b, axis=1), 1e-8))
        return _bce_with_logits(sim, t).mean()

    sa = branch(sa1, sa2)
    gl = branch(glca1, glca2)
    pw = branch(pwca1, pwca2)

    cls = rollout[:, 0, 1:]
    ent = -(cls * jnp.log(cls + 1e-8)).sum(1)
    pen = jnp.maximum(0.5 * math.log(rollout.shape[1] - 1) - ent, 0.0).mean()

    total = (LOSS_WEIGHTS["bce"] * bce + LOSS_WEIGHTS["focal"] * focal
             + LOSS_WEIGHTS["triplet"] * trip + LOSS_WEIGHTS["sa_weight"] * sa
             + LOSS_WEIGHTS["glca_weight"] * gl + LOSS_WEIGHTS["pwca_weight"] * pw)
    return total + jnp.where(pen > 0.0, 0.01 * pen, 0.0)


# ---------------- demo --------------------------------------------------------
if __name__ == "__main__":
    B, D, S = 8, 32, 16
    key = jax.random.PRNGKey(0)
    keys = jax.random.split(key, 12)

    verification_score = jax.random.normal(keys[0], (B, 1), jnp.float32)
    targets = jax.random.bernoulli(keys[1], 0.5, (B, 1)).astype(jnp.float32)
    combined1 = jax.random.normal(keys[2], (B, D), jnp.float32)
    combined2 = jax.random.normal(keys[3], (B, D), jnp.float32)
    sa1 = jax.random.normal(keys[4], (B, D), jnp.float32)
    sa2 = jax.random.normal(keys[5], (B, D), jnp.float32)
    glca1 = jax.random.normal(keys[6], (B, D), jnp.float32)
    glca2 = jax.random.normal(keys[7], (B, D), jnp.float32)
    pwca1 = jax.random.normal(keys[8], (B, D), jnp.float32)
    pwca2 = jax.random.normal(keys[9], (B, D), jnp.float32)
    attention_rollout = jax.nn.softmax(
        jax.random.normal(keys[10], (B, S, S), jnp.float32), axis=-1)

    total, stats = combined_loss(
        verification_score, targets, combined1, combined2,
        sa1, sa2, glca1, glca2, pwca1, pwca2, attention_rollout)
    total = jax.block_until_ready(total)

    ref = reference_total(
        verification_score, targets, combined1, combined2,
        sa1, sa2, glca1, glca2, pwca1, pwca2, attention_rollout)
    np.testing.assert_allclose(np.asarray(total), np.asarray(ref),
                               rtol=5e-3, atol=5e-3)

    print("KERNEL_OK")
</pallas_src>

<mosaic_0001>
module attributes {stable_mosaic.version = 11 : i64} {
  func.func @combined_loss_kernel(%arg0: memref<1x8xf32, #tpu.memory_space<vmem>>, %arg1: memref<1x8xf32, #tpu.memory_space<vmem>>, %arg2: memref<8x1xf32, #tpu.memory_space<vmem>>, %arg3: memref<8x32xf32, #tpu.memory_space<vmem>>, %arg4: memref<8x32xf32, #tpu.memory_space<vmem>>, %arg5: memref<8x32xf32, #tpu.memory_space<vmem>>, %arg6: memref<8x32xf32, #tpu.memory_space<vmem>>, %arg7: memref<8x32xf32, #tpu.memory_space<vmem>>, %arg8: memref<8x32xf32, #tpu.memory_space<vmem>>, %arg9: memref<8x32xf32, #tpu.memory_space<vmem>>, %arg10: memref<8x32xf32, #tpu.memory_space<vmem>>, %arg11: memref<8x16xf32, #tpu.memory_space<vmem>>, %arg12: memref<1x128xf32, #tpu.memory_space<vmem>>) attributes {dimension_semantics = [], scalar_prefetch = 0 : i64, scratch_operands = 0 : i64, tpu.core_type = #tpu.core_type<tc>} {
    %c0 = arith.constant 0 : index
    %c0_0 = arith.constant 0 : index
    %0 = vector.load %arg0[%c0, %c0_0] : memref<1x8xf32, #tpu.memory_space<vmem>>, vector<1x8xf32>
    %c0_1 = arith.constant 0 : index
    %c0_2 = arith.constant 0 : index
    %1 = vector.load %arg1[%c0_1, %c0_2] : memref<1x8xf32, #tpu.memory_space<vmem>>, vector<1x8xf32>
    %c0_3 = arith.constant 0 : index
    %c0_4 = arith.constant 0 : index
    %2 = vector.load %arg2[%c0_3, %c0_4] : memref<8x1xf32, #tpu.memory_space<vmem>>, vector<8x1xf32>
    %cst = arith.constant 0.000000e+00 : f32
    %3 = vector.broadcast %cst : f32 to vector<1x8xf32>
    %4 = arith.maximumf %0, %3 : vector<1x8xf32>
    %5 = arith.mulf %0, %1 : vector<1x8xf32>
    %6 = arith.subf %4, %5 : vector<1x8xf32>
    %7 = math.absf %0 : vector<1x8xf32>
    %cst_5 = arith.constant 0.000000e+00 : f32
    %8 = vector.broadcast %cst_5 : f32 to vector<1x8xf32>
    %9 = arith.subf %8, %7 : vector<1x8xf32>
    %10 = math.exp %9 : vector<1x8xf32>
    %11 = math.log1p %10 : vector<1x8xf32>
    %12 = arith.addf %6, %11 : vector<1x8xf32>
    %13 = vector.shape_cast %12 : vector<1x8xf32> to vector<1x1x8xf32>
    %cst_6 = arith.constant dense<0.000000e+00> : vector<1xf32>
    %14 = vector.multi_reduction <add>, %13, %cst_6 [1, 2] : vector<1x1x8xf32> to vector<1xf32>
    %15 = vector.shape_cast %14 : vector<1xf32> to vector<1x1x1xf32>
    %16 = vector.extract %15[0, 0, 0] : f32 from vector<1x1x1xf32>
    %cst_7 = arith.constant 8.000000e+00 : f32
    %17 = arith.divf %16, %cst_7 : f32
    %18 = arith.negf %0 : vector<1x8xf32>
    %19 = math.exp %18 : vector<1x8xf32>
    %cst_8 = arith.constant 1.000000e+00 : f32
    %20 = vector.broadcast %cst_8 : f32 to vector<1x8xf32>
    %21 = arith.addf %20, %19 : vector<1x8xf32>
    %22 = arith.divf %20, %21 : vector<1x8xf32>
    %23 = arith.mulf %22, %1 : vector<1x8xf32>
    %cst_9 = arith.constant 1.000000e+00 : f32
    %24 = vector.broadcast %cst_9 : f32 to vector<1x8xf32>
    %25 = arith.subf %24, %22 : vector<1x8xf32>
    %cst_10 = arith.constant 1.000000e+00 : f32
    %26 = vector.broadcast %cst_10 : f32 to vector<1x8xf32>
    %27 = arith.subf %26, %1 : vector<1x8xf32>
    %28 = arith.mulf %25, %27 : vector<1x8xf32>
    %29 = arith.addf %23, %28 : vector<1x8xf32>
    %cst_11 = arith.constant 2.500000e-01 : f32
    %30 = vector.broadcast %cst_11 : f32 to vector<1x8xf32>
    %31 = arith.mulf %30, %1 : vector<1x8xf32>
    %cst_12 = arith.constant 1.000000e+00 : f32
    %32 = vector.broadcast %cst_12 : f32 to vector<1x8xf32>
    %33 = arith.subf %32, %1 : vector<1x8xf32>
    %cst_13 = arith.constant 7.500000e-01 : f32
    %34 = vector.broadcast %cst_13 : f32 to vector<1x8xf32>
    %35 = arith.mulf %34, %33 : vector<1x8xf32>
    %36 = arith.addf %31, %35 : vector<1x8xf32>
    %cst_14 = arith.constant 1.000000e+00 : f32
    %37 = vector.broadcast %cst_14 : f32 to vector<1x8xf32>
    %38 = arith.subf %37, %29 : vector<1x8xf32>
    %39 = arith.mulf %38, %38 : vector<1x8xf32>
    %40 = arith.mulf %36, %39 : vector<1x8xf32>
    %41 = arith.mulf %40, %12 : vector<1x8xf32>
    %42 = vector.shape_cast %41 : vector<1x8xf32> to vector<1x1x8xf32>
    %cst_15 = arith.constant dense<0.000000e+00> : vector<1xf32>
    %43 = vector.multi_reduction <add>, %42, %cst_15 [1, 2] : vector<1x1x8xf32> to vector<1xf32>
    %44 = vector.shape_cast %43 : vector<1xf32> to vector<1x1x1xf32>
    %45 = vector.extract %44[0, 0, 0] : f32 from vector<1x1x1xf32>
    %cst_16 = arith.constant 8.000000e+00 : f32
    %46 = arith.divf %45, %cst_16 : f32
    %c0_17 = arith.constant 0 : index
    %c0_18 = arith.constant 0 : index
    %47 = vector.load %arg3[%c0_17, %c0_18] : memref<8x32xf32, #tpu.memory_space<vmem>>, vector<8x32xf32>
    %c0_19 = arith.constant 0 : index
    %c0_20 = arith.constant 0 : index
    %48 = vector.load %arg4[%c0_19, %c0_20] : memref<8x32xf32, #tpu.memory_space<vmem>>, vector<8x32xf32>
    %49 = tpu.concatenate %47, %48 in 0 : vector<8x32xf32>, vector<8x32xf32> -> vector<16x32xf32>
    %cst_21 = arith.constant dense<0.000000e+00> : vector<16x16xf32>
    %50 = tpu.matmul %49, %49, %cst_21 {dimension_numbers = #tpu.dot_dimension_numbers<[1], [1], [0], [0], [0, 0, 1, 0], [], []>} : vector<16x32xf32>, vector<16x32xf32>, vector<16x16xf32> -> vector<16x16xf32>
    %51 = arith.mulf %49, %49 : vector<16x32xf32>
    %cst_22 = arith.constant dense<0.000000e+00> : vector<16xf32>
    %52 = vector.multi_reduction <add>, %51, %cst_22 [1] : vector<16x32xf32> to vector<16xf32>
    %53 = vector.shape_cast %52 : vector<16xf32> to vector<16x1xf32>
    %54 = tpu.iota {dimensions = array<i32: 0>} : vector<16x16xi32>
    %55 = tpu.iota {dimensions = array<i32: 1>} : vector<16x16xi32>
    %56 = arith.cmpi eq, %54, %55 : vector<16x16xi32>
    %cst_23 = arith.constant 0.000000e+00 : f32
    %57 = vector.broadcast %cst_23 : f32 to vector<16x16xf32>
    %58 = arith.select %56, %50, %57 : vector<16x16xi1>, vector<16x16xf32>
    %cst_24 = arith.constant dense<0.000000e+00> : vector<16xf32>
    %59 = vector.multi_reduction <add>, %58, %cst_24 [0] : vector<16x16xf32> to vector<16xf32>
    %60 = vector.shape_cast %59 : vector<16xf32> to vector<1x16xf32>
    %cst_25 = arith.constant 2.000000e+00 : f32
    %61 = vector.broadcast %cst_25 : f32 to vector<16x16xf32>
    %62 = arith.mulf %61, %50 : vector<16x16xf32>
    %63 = vector.broadcast %60 : vector<1x16xf32> to vector<16x16xf32>
    %64 = arith.subf %63, %62 : vector<16x16xf32>
    %65 = vector.broadcast %53 : vector<16x1xf32> to vector<16x16xf32>
    %66 = arith.addf %64, %65 : vector<16x16xf32>
    %cst_26 = arith.constant 0.000000e+00 : f32
    %67 = vector.broadcast %cst_26 : f32 to vector<16x16xf32>
    %68 = arith.maximumf %66, %67 : vector<16x16xf32>
    %cst_27 = arith.constant 9.99999996E-13 : f32
    %69 = vector.broadcast %cst_27 : f32 to vector<16x16xf32>
    %70 = arith.addf %68, %69 : vector<16x16xf32>
    %71 = math.sqrt %70 : vector<16x16xf32>
    %72 = tpu.concatenate %2, %2 in 0 : vector<8x1xf32>, vector<8x1xf32> -> vector<16x1xf32>
    %73 = tpu.concatenate %1, %1 in 1 : vector<1x8xf32>, vector<1x8xf32> -> vector<1x16xf32>
    %74 = vector.broadcast %72 : vector<16x1xf32> to vector<16x16xf32>
    %75 = vector.broadcast %73 : vector<1x16xf32> to vector<16x16xf32>
    %76 = arith.cmpf oeq, %74, %75 : vector<16x16xf32>
    %cst_28 = arith.constant dense<true> : vector<16x16xi1>
    %77 = arith.xori %56, %cst_28 : vector<16x16xi1>
    %78 = arith.andi %76, %77 : vector<16x16xi1>
    %cst_29 = arith.constant 0.000000e+00 : f32
    %79 = vector.broadcast %cst_29 : f32 to vector<16x16xf32>
    %80 = arith.select %78, %71, %79 : vector<16x16xi1>, vector<16x16xf32>
    %cst_30 = arith.constant dense<0xFF800000> : vector<16xf32>
    %81 = vector.multi_reduction <maximumf>, %80, %cst_30 [1] : vector<16x16xf32> to vector<16xf32>
    %82 = vector.shape_cast %81 : vector<16xf32> to vector<16x1xf32>
    %cst_31 = arith.constant 1.000000e+06 : f32
    %83 = vector.broadcast %cst_31 : f32 to vector<16x16xf32>
    %84 = arith.addf %71, %83 : vector<16x16xf32>
    %85 = arith.select %76, %84, %71 : vector<16x16xi1>, vector<16x16xf32>
    %cst_32 = arith.constant dense<0x7F800000> : vector<16xf32>
    %86 = vector.multi_reduction <minimumf>, %85, %cst_32 [1] : vector<16x16xf32> to vector<16xf32>
    %87 = vector.shape_cast %86 : vector<16xf32> to vector<16x1xf32>
    %88 = arith.subf %82, %87 : vector<16x1xf32>
    %cst_33 = arith.constant 3.000000e-01 : f32
    %89 = vector.broadcast %cst_33 : f32 to vector<16x1xf32>
    %90 = arith.addf %88, %89 : vector<16x1xf32>
    %cst_34 = arith.constant 0.000000e+00 : f32
    %91 = vector.broadcast %cst_34 : f32 to vector<16x1xf32>
    %92 = arith.maximumf %90, %91 : vector<16x1xf32>
    %93 = vector.shape_cast %92 : vector<16x1xf32> to vector<1x16x1xf32>
    %cst_35 = arith.constant dense<0.000000e+00> : vector<1xf32>
    %94 = vector.multi_reduction <add>, %93, %cst_35 [1, 2] : vector<1x16x1xf32> to vector<1xf32>
    %95 = vector.shape_cast %94 : vector<1xf32> to vector<1x1x1xf32>
    %96 = vector.extract %95[0, 0, 0] : f32 from vector<1x1x1xf32>
    %cst_36 = arith.constant 1.600000e+01 : f32
    %97 = arith.divf %96, %cst_36 : f32
    %c0_37 = arith.constant 0 : index
    %c0_38 = arith.constant 0 : index
    %98 = vector.load %arg5[%c0_37, %c0_38] : memref<8x32xf32, #tpu.memory_space<vmem>>, vector<8x32xf32>
    %c0_39 = arith.constant 0 : index
    %c0_40 = arith.constant 0 : index
    %99 = vector.load %arg6[%c0_39, %c0_40] : memref<8x32xf32, #tpu.memory_space<vmem>>, vector<8x32xf32>
    %100 = arith.mulf %98, %99 : vector<8x32xf32>
    %cst_41 = arith.constant dense<0.000000e+00> : vector<8xf32>
    %101 = vector.multi_reduction <add>, %100, %cst_41 [1] : vector<8x32xf32> to vector<8xf32>
    %102 = vector.shape_cast %101 : vector<8xf32> to vector<8x1xf32>
    %103 = arith.mulf %98, %98 : vector<8x32xf32>
    %cst_42 = arith.constant dense<0.000000e+00> : vector<8xf32>
    %104 = vector.multi_reduction <add>, %103, %cst_42 [1] : vector<8x32xf32> to vector<8xf32>
    %105 = vector.shape_cast %104 : vector<8xf32> to vector<8x1xf32>
    %106 = arith.mulf %99, %99 : vector<8x32xf32>
    %cst_43 = arith.constant dense<0.000000e+00> : vector<8xf32>
    %107 = vector.multi_reduction <add>, %106, %cst_43 [1] : vector<8x32xf32> to vector<8xf32>
    %108 = vector.shape_cast %107 : vector<8xf32> to vector<8x1xf32>
    %109 = arith.mulf %105, %108 : vector<8x1xf32>
    %cst_44 = arith.constant 1.000000e-16 : f32
    %110 = vector.broadcast %cst_44 : f32 to vector<8x1xf32>
    %111 = arith.maximumf %109, %110 : vector<8x1xf32>
    %112 = math.rsqrt %111 : vector<8x1xf32>
    %113 = arith.mulf %102, %112 : vector<8x1xf32>
    %cst_45 = arith.constant 0.000000e+00 : f32
    %114 = vector.broadcast %cst_45 : f32 to vector<8x1xf32>
    %115 = arith.maximumf %113, %114 : vector<8x1xf32>
    %116 = arith.mulf %113, %2 : vector<8x1xf32>
    %117 = arith.subf %115, %116 : vector<8x1xf32>
    %118 = math.absf %113 : vector<8x1xf32>
    %cst_46 = arith.constant 0.000000e+00 : f32
    %119 = vector.broadcast %cst_46 : f32 to vector<8x1xf32>
    %120 = arith.subf %119, %118 : vector<8x1xf32>
    %121 = math.exp %120 : vector<8x1xf32>
    %122 = math.log1p %121 : vector<8x1xf32>
    %123 = arith.addf %117, %122 : vector<8x1xf32>
    %124 = vector.shape_cast %123 : vector<8x1xf32> to vector<1x8x1xf32>
    %cst_47 = arith.constant dense<0.000000e+00> : vector<1xf32>
    %125 = vector.multi_reduction <add>, %124, %cst_47 [1, 2] : vector<1x8x1xf32> to vector<1xf32>
    %126 = vector.shape_cast %125 : vector<1xf32> to vector<1x1x1xf32>
    %127 = vector.extract %126[0, 0, 0] : f32 from vector<1x1x1xf32>
    %cst_48 = arith.constant 8.000000e+00 : f32
    %128 = arith.divf %127, %cst_48 : f32
    %c0_49 = arith.constant 0 : index
    %c0_50 = arith.constant 0 : index
    %129 = vector.load %arg7[%c0_49, %c0_50] : memref<8x32xf32, #tpu.memory_space<vmem>>, vector<8x32xf32>
    %c0_51 = arith.constant 0 : index
    %c0_52 = arith.constant 0 : index
    %130 = vector.load %arg8[%c0_51, %c0_52] : memref<8x32xf32, #tpu.memory_space<vmem>>, vector<8x32xf32>
    %131 = arith.mulf %129, %130 : vector<8x32xf32>
    %cst_53 = arith.constant dense<0.000000e+00> : vector<8xf32>
    %132 = vector.multi_reduction <add>, %131, %cst_53 [1] : vector<8x32xf32> to vector<8xf32>
    %133 = vector.shape_cast %132 : vector<8xf32> to vector<8x1xf32>
    %134 = arith.mulf %129, %129 : vector<8x32xf32>
    %cst_54 = arith.constant dense<0.000000e+00> : vector<8xf32>
    %135 = vector.multi_reduction <add>, %134, %cst_54 [1] : vector<8x32xf32> to vector<8xf32>
    %136 = vector.shape_cast %135 : vector<8xf32> to vector<8x1xf32>
    %137 = arith.mulf %130, %130 : vector<8x32xf32>
    %cst_55 = arith.constant dense<0.000000e+00> : vector<8xf32>
    %138 = vector.multi_reduction <add>, %137, %cst_55 [1] : vector<8x32xf32> to vector<8xf32>
    %139 = vector.shape_cast %138 : vector<8xf32> to vector<8x1xf32>
    %140 = arith.mulf %136, %139 : vector<8x1xf32>
    %cst_56 = arith.constant 1.000000e-16 : f32
    %141 = vector.broadcast %cst_56 : f32 to vector<8x1xf32>
    %142 = arith.maximumf %140, %141 : vector<8x1xf32>
    %143 = math.rsqrt %142 : vector<8x1xf32>
    %144 = arith.mulf %133, %143 : vector<8x1xf32>
    %cst_57 = arith.constant 0.000000e+00 : f32
    %145 = vector.broadcast %cst_57 : f32 to vector<8x1xf32>
    %146 = arith.maximumf %144, %145 : vector<8x1xf32>
    %147 = arith.mulf %144, %2 : vector<8x1xf32>
    %148 = arith.subf %146, %147 : vector<8x1xf32>
    %149 = math.absf %144 : vector<8x1xf32>
    %cst_58 = arith.constant 0.000000e+00 : f32
    %150 = vector.broadcast %cst_58 : f32 to vector<8x1xf32>
    %151 = arith.subf %150, %149 : vector<8x1xf32>
    %152 = math.exp %151 : vector<8x1xf32>
    %153 = math.log1p %152 : vector<8x1xf32>
    %154 = arith.addf %148, %153 : vector<8x1xf32>
    %155 = vector.shape_cast %154 : vector<8x1xf32> to vector<1x8x1xf32>
    %cst_59 = arith.constant dense<0.000000e+00> : vector<1xf32>
    %156 = vector.multi_reduction <add>, %155, %cst_59 [1, 2] : vector<1x8x1xf32> to vector<1xf32>
    %157 = vector.shape_cast %156 : vector<1xf32> to vector<1x1x1xf32>
    %158 = vector.extract %157[0, 0, 0] : f32 from vector<1x1x1xf32>
    %cst_60 = arith.constant 8.000000e+00 : f32
    %159 = arith.divf %158, %cst_60 : f32
    %c0_61 = arith.constant 0 : index
    %c0_62 = arith.constant 0 : index
    %160 = vector.load %arg9[%c0_61, %c0_62] : memref<8x32xf32, #tpu.memory_space<vmem>>, vector<8x32xf32>
    %c0_63 = arith.constant 0 : index
    %c0_64 = arith.constant 0 : index
    %161 = vector.load %arg10[%c0_63, %c0_64] : memref<8x32xf32, #tpu.memory_space<vmem>>, vector<8x32xf32>
    %162 = arith.mulf %160, %161 : vector<8x32xf32>
    %cst_65 = arith.constant dense<0.000000e+00> : vector<8xf32>
    %163 = vector.multi_reduction <add>, %162, %cst_65 [1] : vector<8x32xf32> to vector<8xf32>
    %164 = vector.shape_cast %163 : vector<8xf32> to vector<8x1xf32>
    %165 = arith.mulf %160, %160 : vector<8x32xf32>
    %cst_66 = arith.constant dense<0.000000e+00> : vector<8xf32>
    %166 = vector.multi_reduction <add>, %165, %cst_66 [1] : vector<8x32xf32> to vector<8xf32>
    %167 = vector.shape_cast %166 : vector<8xf32> to vector<8x1xf32>
    %168 = arith.mulf %161, %161 : vector<8x32xf32>
    %cst_67 = arith.constant dense<0.000000e+00> : vector<8xf32>
    %169 = vector.multi_reduction <add>, %168, %cst_67 [1] : vector<8x32xf32> to vector<8xf32>
    %170 = vector.shape_cast %169 : vector<8xf32> to vector<8x1xf32>
    %171 = arith.mulf %167, %170 : vector<8x1xf32>
    %cst_68 = arith.constant 1.000000e-16 : f32
    %172 = vector.broadcast %cst_68 : f32 to vector<8x1xf32>
    %173 = arith.maximumf %171, %172 : vector<8x1xf32>
    %174 = math.rsqrt %173 : vector<8x1xf32>
    %175 = arith.mulf %164, %174 : vector<8x1xf32>
    %cst_69 = arith.constant 0.000000e+00 : f32
    %176 = vector.broadcast %cst_69 : f32 to vector<8x1xf32>
    %177 = arith.maximumf %175, %176 : vector<8x1xf32>
    %178 = arith.mulf %175, %2 : vector<8x1xf32>
    %179 = arith.subf %177, %178 : vector<8x1xf32>
    %180 = math.absf %175 : vector<8x1xf32>
    %cst_70 = arith.constant 0.000000e+00 : f32
    %181 = vector.broadcast %cst_70 : f32 to vector<8x1xf32>
    %182 = arith.subf %181, %180 : vector<8x1xf32>
    %183 = math.exp %182 : vector<8x1xf32>
    %184 = math.log1p %183 : vector<8x1xf32>
    %185 = arith.addf %179, %184 : vector<8x1xf32>
    %186 = vector.shape_cast %185 : vector<8x1xf32> to vector<1x8x1xf32>
    %cst_71 = arith.constant dense<0.000000e+00> : vector<1xf32>
    %187 = vector.multi_reduction <add>, %186, %cst_71 [1, 2] : vector<1x8x1xf32> to vector<1xf32>
    %188 = vector.shape_cast %187 : vector<1xf32> to vector<1x1x1xf32>
    %189 = vector.extract %188[0, 0, 0] : f32 from vector<1x1x1xf32>
    %cst_72 = arith.constant 8.000000e+00 : f32
    %190 = arith.divf %189, %cst_72 : f32
    %c0_73 = arith.constant 0 : index
    %c0_74 = arith.constant 0 : index
    %191 = vector.load %arg11[%c0_73, %c0_74] : memref<8x16xf32, #tpu.memory_space<vmem>>, vector<8x16xf32>
    %192 = tpu.iota {dimensions = array<i32: 1>} : vector<8x16xi32>
    %c1_i32 = arith.constant 1 : i32
    %193 = vector.broadcast %c1_i32 : i32 to vector<8x16xi32>
    %194 = arith.cmpi sge, %192, %193 : vector<8x16xi32>
    %cst_75 = arith.constant 9.99999993E-9 : f32
    %195 = vector.broadcast %cst_75 : f32 to vector<8x16xf32>
    %196 = arith.addf %191, %195 : vector<8x16xf32>
    %197 = math.log %196 : vector<8x16xf32>
    %198 = arith.mulf %191, %197 : vector<8x16xf32>
    %cst_76 = arith.constant 0.000000e+00 : f32
    %199 = vector.broadcast %cst_76 : f32 to vector<8x16xf32>
    %200 = arith.select %194, %198, %199 : vector<8x16xi1>, vector<8x16xf32>
    %cst_77 = arith.constant dense<0.000000e+00> : vector<8xf32>
    %201 = vector.multi_reduction <add>, %200, %cst_77 [1] : vector<8x16xf32> to vector<8xf32>
    %202 = vector.shape_cast %201 : vector<8xf32> to vector<8x1xf32>
    %cst_78 = arith.constant 0.000000e+00 : f32
    %203 = vector.broadcast %cst_78 : f32 to vector<8x1xf32>
    %204 = arith.subf %203, %202 : vector<8x1xf32>
    %cst_79 = arith.constant 1.35402513 : f32
    %205 = vector.broadcast %cst_79 : f32 to vector<8x1xf32>
    %206 = arith.subf %205, %204 : vector<8x1xf32>
    %cst_80 = arith.constant 0.000000e+00 : f32
    %207 = vector.broadcast %cst_80 : f32 to vector<8x1xf32>
    %208 = arith.maximumf %206, %207 : vector<8x1xf32>
    %209 = vector.shape_cast %208 : vector<8x1xf32> to vector<1x8x1xf32>
    %cst_81 = arith.constant dense<0.000000e+00> : vector<1xf32>
    %210 = vector.multi_reduction <add>, %209, %cst_81 [1, 2] : vector<1x8x1xf32> to vector<1xf32>
    %211 = vector.shape_cast %210 : vector<1xf32> to vector<1x1x1xf32>
    %212 = vector.extract %211[0, 0, 0] : f32 from vector<1x1x1xf32>
    %cst_82 = arith.constant 8.000000e+00 : f32
    %213 = arith.divf %212, %cst_82 : f32
    %cst_83 = arith.constant 1.000000e+00 : f32
    %214 = arith.mulf %cst_83, %17 : f32
    %cst_84 = arith.constant 5.000000e-01 : f32
    %215 = arith.mulf %cst_84, %46 : f32
    %216 = arith.addf %214, %215 : f32
    %cst_85 = arith.constant 3.000000e-01 : f32
    %217 = arith.mulf %cst_85, %97 : f32
    %218 = arith.addf %216, %217 : f32
    %cst_86 = arith.constant 2.000000e-01 : f32
    %219 = arith.mulf %cst_86, %128 : f32
    %220 = arith.addf %218, %219 : f32
    %cst_87 = arith.constant 2.000000e-01 : f32
    %221 = arith.mulf %cst_87, %159 : f32
    %222 = arith.addf %220, %221 : f32
    %cst_88 = arith.constant 2.000000e-01 : f32
    %223 = arith.mulf %cst_88, %190 : f32
    %224 = arith.addf %222, %223 : f32
    %cst_89 = arith.constant 0.000000e+00 : f32
    %225 = arith.cmpf ogt, %213, %cst_89 : f32
    %cst_90 = arith.constant 0.00999999977 : f32
    %226 = arith.mulf %cst_90, %213 : f32
    %cst_91 = arith.constant 0.000000e+00 : f32
    %227 = arith.select %225, %226, %cst_91 : f32
    %228 = arith.addf %224, %227 : f32
    %229 = tpu.iota {dimensions = array<i32: 1>} : vector<1x128xi32>
    %cst_92 = arith.constant 0.000000e+00 : f32
    %230 = vector.broadcast %cst_92 : f32 to vector<1x128xf32>
    %c0_i32 = arith.constant 0 : i32
    %231 = vector.broadcast %c0_i32 : i32 to vector<1x128xi32>
    %232 = arith.cmpi eq, %229, %231 : vector<1x128xi32>
    %233 = vector.broadcast %17 : f32 to vector<1x128xf32>
    %234 = arith.select %232, %233, %230 : vector<1x128xi1>, vector<1x128xf32>
    %c1_i32_93 = arith.constant 1 : i32
    %235 = vector.broadcast %c1_i32_93 : i32 to vector<1x128xi32>
    %236 = arith.cmpi eq, %229, %235 : vector<1x128xi32>
    %237 = vector.broadcast %46 : f32 to vector<1x128xf32>
    %238 = arith.select %236, %237, %234 : vector<1x128xi1>, vector<1x128xf32>
    %c2_i32 = arith.constant 2 : i32
    %239 = vector.broadcast %c2_i32 : i32 to vector<1x128xi32>
    %240 = arith.cmpi eq, %229, %239 : vector<1x128xi32>
    %241 = vector.broadcast %97 : f32 to vector<1x128xf32>
    %242 = arith.select %240, %241, %238 : vector<1x128xi1>, vector<1x128xf32>
    %c3_i32 = arith.constant 3 : i32
    %243 = vector.broadcast %c3_i32 : i32 to vector<1x128xi32>
    %244 = arith.cmpi eq, %229, %243 : vector<1x128xi32>
    %245 = vector.broadcast %128 : f32 to vector<1x128xf32>
    %246 = arith.select %244, %245, %242 : vector<1x128xi1>, vector<1x128xf32>
    %c4_i32 = arith.constant 4 : i32
    %247 = vector.broadcast %c4_i32 : i32 to vector<1x128xi32>
    %248 = arith.cmpi eq, %229, %247 : vector<1x128xi32>
    %249 = vector.broadcast %159 : f32 to vector<1x128xf32>
    %250 = arith.select %248, %249, %246 : vector<1x128xi1>, vector<1x128xf32>
    %c5_i32 = arith.constant 5 : i32
    %251 = vector.broadcast %c5_i32 : i32 to vector<1x128xi32>
    %252 = arith.cmpi eq, %229, %251 : vector<1x128xi32>
    %253 = vector.broadcast %190 : f32 to vector<1x128xf32>
    %254 = arith.select %252, %253, %250 : vector<1x128xi1>, vector<1x128xf32>
    %c6_i32 = arith.constant 6 : i32
    %255 = vector.broadcast %c6_i32 : i32 to vector<1x128xi32>
    %256 = arith.cmpi eq, %229, %255 : vector<1x128xi32>
    %257 = vector.broadcast %213 : f32 to vector<1x128xf32>
    %258 = arith.select %256, %257, %254 : vector<1x128xi1>, vector<1x128xf32>
    %c7_i32 = arith.constant 7 : i32
    %259 = vector.broadcast %c7_i32 : i32 to vector<1x128xi32>
    %260 = arith.cmpi eq, %229, %259 : vector<1x128xi32>
    %261 = vector.broadcast %228 : f32 to vector<1x128xf32>
    %262 = arith.select %260, %261, %258 : vector<1x128xi1>, vector<1x128xf32>
    %c0_94 = arith.constant 0 : index
    %c0_95 = arith.constant 0 : index
    %263 = vector.load %arg12[%c0_94, %c0_95] : memref<1x128xf32, #tpu.memory_space<vmem>>, vector<1x128xf32>
    tpu.vector_store %arg12[%c0_94, %c0_95], %262 {strides = array<i32>} : memref<1x128xf32, #tpu.memory_space<vmem>>, vector<1x128xf32>,
    return
  }
}

</mosaic_0001>

<bundles_post_ra>
// kernel: combined_loss.1
= control target key start
LH: loop header
LB: loop body
LE: loop exit
PB: predicated region body
PF: predicated region fallthrough
CT: control target
= control target key end

     0   :  { %17 = vsyncpa [#allocation3], 0  ;;  %s629_s21 = smov [#allocation2]   ;;  %s917_s0 = inlined_call_operand.hbm [shape: f32[1,8], index: 0, kind: input, shape index: {}]   ;;  %s918_s1 = inlined_call_operand.vmem [shape: f32[1,8], index: 1, kind: input, shape index: {}]   ;;  %s919_s2 = inlined_call_operand.vmem [shape: f32[8,1], index: 2, kind: input, shape index: {}]   ;;  %s920_s3 = inlined_call_operand.vmem [shape: f32[8,32], index: 3, kind: input, shape index: {}]   ;;  %s921_s4 = inlined_call_operand.vmem [shape: f32[8,32], index: 4, kind: input, shape index: {}]   ;;  %s922_s5 = inlined_call_operand.vmem [shape: f32[8,32], index: 5, kind: input, shape index: {}]   ;;  %s923_s6 = inlined_call_operand.vmem [shape: f32[8,32], index: 6, kind: input, shape index: {}]   ;;  %s924_s7 = inlined_call_operand.vmem [shape: f32[8,32], index: 7, kind: input, shape index: {}]   ;;  %s925_s8 = inlined_call_operand.vmem [shape: f32[8,32], index: 8, kind: input, shape index: {}]   ;;  %s926_s9 = inlined_call_operand.vmem [shape: f32[8,32], index: 9, kind: input, shape index: {}]   ;;  %s927_s10 = inlined_call_operand.vmem [shape: f32[8,32], index: 10, kind: input, shape index: {}]   ;;  %s928_s11 = inlined_call_operand.vmem [shape: f32[8,16], index: 11, kind: input, shape index: {}]   ;;  %s929_s12 = inlined_call_operand.vmem [shape: f32[1,128], index: 12, kind: output, shape index: {}]  }
   0x1   :  { %s24_s22 = sshll.u32 %s629_s21, 4  ;;  %s605_s25 = scalar_lea.hbm %s917_s0, 16  ;;  %s25_s22 = int_to_ptr.vmem [resolvable:$true] %s24_s22 }
   0x2   :  { %p606_p0 = scmp.ne.s32.totalorder %s917_s0, %s605_s25  ;;  %p609_p1 = scmp.lt.u32.totalorder %s605_s25, %s917_s0 }
   0x4   :  { %p611_p2 = pnand %p609_p1, %p606_p0 }
   0x6   :  { %614 = shalt.err (!%p611_p2)
}
   0x7   :  { %s615_s30 = scalar_lea.vmem %s25_s22, 16  ;;  %s619_s13 = scalar_lea.vmem %s25_s22, 32 }
   0x8   :  { %p616_p3 = scmp.ne.s32.totalorder %s25_s22, %s615_s30  ;;  %p620_p4 = scmp.lt.s32.totalorder %s25_s22, %s25_s22 }
   0x9   :  { %p621_p5 = scmp.lt.s32.totalorder %s619_s13, %s615_s30 }
   0xb   :  { %p622_p6 = por %p621_p5, %p620_p4 }
   0xd   :  { %p623_p7 = pnand %p622_p6, %p616_p3 }
   0xf   :  { %626 = shalt.err (!%p623_p7)
}
  0x10   :  { %27 = dma.hbm_to_vmem [thread:$0]  %s917_s0, 16, %s25_s22, [#allocation3]  }
  0x11   :  { %627 = dma.done.wait [#allocation3], 16  }
  0x12   :  { %628 = vsyncadd [#allocation3], 4294967280  ;;  %v210_v0 = vlaneseq  ;;  %v630_v1 = vmov 0   ;;  %vm120_vm0 = vcmask 261120   ;;  %v118_v4 = vld [vmem:[%s920_s3] sm:$0xff]  ;;  %vm219_vm3 = vcmask 130048  }
  0x13   :  { %571 = vset.pattern.permute.xlu1 %v630_v1  ;;  %572 = vset.pattern.permute.xlu0 %v630_v1  ;;  %vm548_vm1 = vmpackc.low %vm120_vm0, %vm120_vm0  ;;  %v119_v5 = vld [vmem:[%s921_s4] sm:$0xff]  ;;  %v202_v8 = vmul.f32 %v118_v4, %v118_v4  ;;  %vm261_vm5 = vcmask 64512   ;;  %vm632_vm9 = vmmov 1  }
  0x14   :  { %v711_v2 = vshrl.u32 %v210_v0, 7  ;;  %v725_v6 = vld [vmem:[%s919_s2] sm:$0xff]  ;;  %v547_v7 = vpack.c.bf16 %v119_v5, %v118_v4  ;;  %544 = vmatprep.mubr.msk.f32.mxu0 %vm120_vm0, %v118_v4  ;;  %v203_v9 = vmul.f32 %v119_v5, %v119_v5  ;;  %s631_s2 = smov 8   ;;  %v782_v63 = vand.u32 127, %v210_v0 }
  0x15   :  { %265 = vperm.xlu1 %571, %v725_v6   ;;  %v732_v10 = vld [vmem:[%s918_s1] sm:$0x1]  ;;  %v204_v13 = vsel %vm120_vm0, %v202_v8, 0.0 }
  0x16   :  { %v256_v3 = vsub.s32 0, %v711_v2  ;;  %v317_v12 = vld [vmem:[%s922_s5] sm:$0xff]  ;;  %549 = vmatprep.subr.msk.bf16.mxu0 %vm548_vm1, %v547_v7  ;;  %205 = vadd.xlane.f32.xlu0 %v204_v13  ;;  %v207_v14 = vsel %vm120_vm0, %v203_v9, 0.0  ;;  %v785_v1 = vadd.s32 8, %v711_v2  ;;  %vm215_vm4 = vcmp.eq.s32.totalorder %v711_v2, %v782_v63 }
  0x17   :  { %552 = vmatpush3.bf16.xpose.msk.msra.mxu0 %vm548_vm1, %v547_v7  ;;  %v323_v15 = vmul.f32 %v317_v12, %v317_v12  ;;  %v365_v16 = vld [vmem:[%s924_s7] sm:$0xff]  ;;  %vm462_vm7 = vcmp.ge.s32.totalorder %v782_v63, 1  ;;  %vm841_vm10 = vmxor %vm215_vm4, %vm632_vm9 }
  0x18   :  { %v257_v11 = vrot.slane %v732_v10, %v256_v3  ;;  %v371_v18 = vmul.f32 %v365_v16, %v365_v16  ;;  %v366_v19 = vld [vmem:[%s925_s8] sm:$0xff]  ;;  %vm216_vm2 = vcmp.eq.s32.totalorder %v785_v1, %v782_v63 }
  0x19   :  { %v324_v17 = vsel %vm120_vm0, %v323_v15, 0.0  ;;  %v375_v21 = vmul.f32 %v366_v19, %v366_v19  ;;  %v413_v22 = vld [vmem:[%s926_s9] sm:$0xff]  ;;  %v367_v32 = vmul.f32 %v366_v19, %v365_v16  ;;  %vm274_vm14 = vmxor %vm216_vm2, %vm632_vm9  ;;  %vm507_vm9 = vcmp.eq.s32.totalorder %v782_v63, 2 }
  0x1a   :  { %258 = vrot.lane.b32.xlu1 %v257_v11, %s631_s2  ;;  %208 = vadd.xlane.f32.xlu0 %v207_v14  ;;  %v372_v20 = vsel %vm120_vm0, %v371_v18, 0.0  ;;  %v419_v24 = vmul.f32 %v413_v22, %v413_v22  ;;  %v414_v25 = vld [vmem:[%s927_s10] sm:$0xff] }
  0x1b   :  { %v376_v23 = vsel %vm120_vm0, %v375_v21, 0.0  ;;  %v423_v27 = vmul.f32 %v414_v25, %v414_v25  ;;  %v318_v28 = vld [vmem:[%s923_s6] sm:$0xff]  ;;  %v368_v33 = vsel %vm120_vm0, %v367_v32, 0.0  ;;  %v415_v34 = vmul.f32 %v414_v25, %v413_v22 }
  0x1c   :  { %v420_v26 = vsel %vm120_vm0, %v419_v24, 0.0  ;;  %v319_v30 = vmul.f32 %v318_v28, %v317_v12  ;;  %v327_v35 = vmul.f32 %v318_v28, %v318_v28  ;;  %v777_v57 = vld [vmem:[#allocation2] sm:$0x1] }
  0x1d   :  { %v424_v29 = vsel %vm120_vm0, %v423_v27, 0.0  ;;  %v416_v36 = vsel %vm120_vm0, %v415_v34, 0.0  ;;  %v531_v58 = vmul.f32 -1.442695, %v777_v57  ;;  %v59_v60 = vand.u32 2147483647, %v777_v57 }
  0x1e   :  { %545 = vmatmul.mubr.msk.f32.vlgmr.msra.gmra.mrb[0].mxu0 %vm120_vm0, %v119_v5  ;;  %325 = vadd.xlane.f32.xlu0 %v324_v17  ;;  %v320_v31 = vsel %vm120_vm0, %v319_v30, 0.0  ;;  %v328_v37 = vsel %vm120_vm0, %v327_v35, 0.0  ;;  %v461_v24 = vld [vmem:[%s928_s11] sm:$0xff] }
  0x1f   :  { %v60_v61 = vsub.f32 0.0, %v59_v60 }
  0x21   :  { %v61_v4 = vmul.f32 1.442695, %v60_v61 }
  0x22   :  { %373 = vadd.xlane.f32.xlu0 %v372_v20 }
  0x26   :  { %377 = vadd.xlane.f32.xlu0 %v376_v23 }
  0x2a   :  { %421 = vadd.xlane.f32.xlu0 %v420_v26 }
  0x2e   :  { %425 = vadd.xlane.f32.xlu0 %v424_v29  ;;  %v463_v29 = vadd.f32 1e-08, %v461_v24 }
  0x32   :  { %321 = vadd.xlane.f32.xlu0 %v320_v31 }
  0x36   :  { %369 = vadd.xlane.f32.xlu0 %v368_v33 }
  0x3a   :  { %417 = vadd.xlane.f32.xlu0 %v416_v36 }
  0x3e   :  { %329 = vadd.xlane.f32.xlu1 %v328_v37 }
  0x94   :  { %v773_v51 = vpop.permute.xlu1 %265 }
  0x98   :  { %v775_v52 = vpop.permute.xlu1 %258 }
  0xa3   :  { %v767_v38 = vpop.xlane.xlu0 %205 }
  0xa7   :  { %v769_v39 = vpop.xlane.xlu0 %208 }
  0xab   :  { %v326_v40 = vpop.xlane.xlu0 %325 }
  0xaf   :  { %v374_v41 = vpop.xlane.xlu0 %373 }
  0xb3   :  { %v378_v42 = vpop.xlane.xlu0 %377 }
  0xb4   :  { %v379_v43 = vmul.f32 %v378_v42, %v374_v41  ;;  %v95_v41 = vsub.f32 1.0, %v732_v10 }
  0xb6   :  { %v380_v44 = vmax.f32 %v379_v43, 1e-16 }
  0xb7   :  { %v422_v45 = vpop.xlane.xlu0 %421 }
  0xb8   :  { %573 = vrsqrt.f32 %v380_v44 }
  0xbb   :  { %v426_v46 = vpop.xlane.xlu0 %425 }
  0xbc   :  { %v427_v56 = vmul.f32 %v426_v46, %v422_v45 }
  0xbe   :  { %v428_v59 = vmax.f32 %v427_v56, 1e-16 }
  0xbf   :  { %v322_v47 = vpop.xlane.xlu0 %321 }
  0xc2   :  { %v574_v48 = vpop.eup %573 }
  0xc3   :  { %v370_v49 = vpop.xlane.xlu0 %369 }
  0xc4   :  { %v771_v50 = vmul.f32 %v574_v48, %v370_v49 }
  0xc7   :  { %v418_v9 = vpop.xlane.xlu0 %417 }
  0xcb   :  { %v330_v53 = vpop.xlane.xlu1 %329 }
  0xcc   :  { %v331_v54 = vmul.f32 %v330_v53, %v326_v40 }
  0xce   :  { %v332_v55 = vmax.f32 %v331_v54, 1e-16 }
  0xd0   :  { %575 = vrsqrt.f32 %v332_v55 }
  0xd1   :  { %577 = vpow2.f32 %v531_v58 }
  0xd2   :  { %579 = vrsqrt.f32 %v428_v59 }
  0xd3   :  { %581 = vpow2.f32 %v61_v4  ;;  %v262_v4 = vsel %vm261_vm5, %v732_v10, %v775_v52 }
  0xd4   :  { %v830_v52 = vrot.slane %v262_v4, %v256_v3 }
  0xd6   :  { %vm272_vm8 = vcmp.eq.f32.partialorder %v773_v51, %v830_v52 }
  0xd7   :  { %vm275_vm15 = vmand %vm272_vm8, %vm841_vm10  ;;  %vm510_vm10 = vcmp.eq.s32.totalorder %v782_v63, 3 }
  0xd8   :  { %vm862_vm1 = vmand %vm272_vm8, %vm274_vm14  ;;  %vm522_vm14 = vcmp.eq.s32.totalorder %v782_v63, 7 }
  0xda   :  { %v576_v62 = vpop.eup %575 }
  0xdb   :  { %v578_v5 = vpop.eup %577  ;;  %v787_v7 = vmul.f32 %v576_v62, %v322_v47 }
  0xdc   :  { %v580_v8 = vpop.eup %579  ;;  %v90_v0 = vadd.f32 1.0, %v578_v5 }
  0xdd   :  { %v338_v14 = vand.u32 2147483647, %v787_v7  ;;  %v797_v15 = vmul.f32 %v580_v8, %v418_v9  ;;  %v582_v25 = vpop.eup %581  ;;  %v98_v8 = vmul.f32 0.25, %v732_v10  ;;  %v56_v9 = vmax.f32 %v777_v57, 0.0 }
  0xde   :  { %583 = vrcp.f32 %v90_v0  ;;  %v63_v31 = vadd.f32 1.0, %v582_v25  ;;  %v66_v53 = vmul.f32 -0.5, %v582_v25  ;;  %v99_v0 = vmul.f32 0.75, %v95_v41 }
  0xdf   :  { %v339_v20 = vsub.f32 0.0, %v338_v14  ;;  %v434_v21 = vand.u32 2147483647, %v797_v15 }
  0xe0   :  { %v67_v61 = vadd.f32 1.0, %v66_v53 }
  0xe1   :  { %v340_v26 = vmul.f32 1.442695, %v339_v20  ;;  %v435_v27 = vsub.f32 0.0, %v434_v21 }
  0xe2   :  { %v68_v14 = vmul.f32 %v582_v25, %v67_v61  ;;  %v431_v61 = vmax.f32 %v797_v15, 0.0 }
  0xe3   :  { %585 = vpow2.f32 %v340_v26  ;;  %v436_v32 = vmul.f32 1.442695, %v435_v27 }
  0xe4   :  { %587 = vlog2.f32 %v463_v29 }
  0xe5   :  { %589 = vlog2.f32 %v63_v31 }
  0xe6   :  { %591 = vpow2.f32 %v436_v32 }
  0xe8   :  { %v584_v33 = vpop.eup %583 }
  0xe9   :  { %v94_v40 = vsub.f32 1.0, %v584_v33  ;;  %v93_v46 = vmul.f32 %v584_v33, %v732_v10 }
  0xeb   :  { %v96_v47 = vmul.f32 %v95_v41, %v94_v40 }
  0xed   :  { %v812_v54 = vpop.eup %585  ;;  %v97_v59 = vadd.f32 %v96_v47, %v93_v46 }
  0xee   :  { %v588_v58 = vpop.eup %587  ;;  %v345_v21 = vmul.f32 -0.5, %v812_v54 }
  0xef   :  { %v590_v60 = vpop.eup %589  ;;  %v465_v5 = vmul.f32 0.6931472, %v588_v58 }
  0xf0   :  { %v815_v62 = vpop.eup %591  ;;  %v346_v31 = vadd.f32 1.0, %v345_v21 }
  0xf1   :  { %v546_v11 = vpop.f32.mrb[0].mxu0 }
  0xf2   :  { %v218_v12 = vsel %vm216_vm2, %v546_v11, 0.0  ;;  %v193_v13 = vpop.f32.mrb[1].mxu0  ;;  %v230_v35 = vmul.f32 2.0, %v546_v11  ;;  %v57_v11 = vmul.f32 %v732_v10, %v777_v57  ;;  %v100_v10 = vadd.f32 %v99_v0, %v98_v8 }
  0xf3   :  { %v221_v16 = vsel %vm219_vm3, %v218_v12, 0.0  ;;  %v217_v17 = vsel %vm215_vm4, %v193_v13, 0.0  ;;  %v229_v36 = vmul.f32 2.0, %v193_v13  ;;  %v101_v12 = vsub.f32 1.0, %v97_v59 }
  0xf4   :  { %v220_v18 = vsel %vm219_vm3, %v217_v17, 0.0  ;;  %v65_v13 = vmul.f32 0.6931472, %v590_v60  ;;  %vm73_vm4 = vcmask 57344   ;;  %v386_v17 = vand.u32 2147483647, %v771_v50 }
  0xf5   :  { %v222_v19 = vadd.f32 %v221_v16, %v220_v18  ;;  %v438_v16 = vadd.f32 1.0, %v815_v62  ;;  %v466_v18 = vmul.f32 %v465_v5, %v461_v24  ;;  %v102_v57 = vmul.f32 %v101_v12, %v101_v12 }
  0xf6   :  { %v387_v52 = vsub.f32 0.0, %v386_v17 }
  0xf7   :  { %v223_v22 = vrot.slane %v222_v19, 4  ;;  %v103_v27 = vmul.f32 %v102_v57, %v100_v10 }
  0xf9   :  { %v224_v23 = vadd.f32 %v223_v22, %v222_v19  ;;  %v58_v19 = vsub.f32 %v56_v9, %v57_v11 }
  0xfb   :  { %v225_v28 = vrot.slane %v224_v23, 2 }
  0xfd   :  { %v226_v30 = vadd.f32 %v225_v28, %v224_v23  ;;  %v467_v23 = vsel %vm462_vm7, %v466_v18, 0.0  ;;  %v441_v28 = vmul.f32 -0.5, %v815_v62  ;;  %v388_v18 = vmul.f32 1.442695, %v387_v52 }
  0xfe   :  { %vm501_vm7 = vcmp.eq.s32.totalorder %v782_v63, 0 }
  0xff   :  { %v227_v34 = vrot.slane %v226_v30, 1  ;;  %v442_v46 = vadd.f32 1.0, %v441_v28 }
 0x101   :  { %v228_v37 = vadd.f32 %v227_v34, %v226_v30  ;;  %v443_v9 = vmul.f32 %v815_v62, %v442_v46 }
 0x103   :  { %v231_v42 = vsub.f32 %v228_v37, %v229_v36  ;;  %v232_v43 = vsub.f32 %v228_v37, %v230_v35  ;;  %v348_v36 = vand.u32 2147483647, %v812_v54 }
 0x105   :  { %v233_v44 = vadd.f32 %v231_v42, %v767_v38  ;;  %v234_v45 = vadd.f32 %v232_v43, %v769_v39  ;;  %v342_v38 = vadd.f32 1.0, %v812_v54  ;;  %v69_v39 = vand.u32 2147483647, %v582_v25 }
 0x106   :  { %v335_v42 = vmax.f32 %v787_v7, 0.0  ;;  %vm875_vm2 = vcmp.lt.f32.partialorder %v348_v36, 0.0004427343 }
 0x107   :  { %v235_v48 = vmax.f32 %v233_v44, 0.0  ;;  %v236_v49 = vmax.f32 %v234_v45, 0.0  ;;  %vm824_vm6 = vcmp.lt.f32.partialorder %v69_v39, 0.0004427343  ;;  %v336_v44 = vmul.f32 %v787_v7, %v725_v6 }
 0x108   :  { %v71_v20 = vsel %vm824_vm6, %v68_v14, %v65_v13  ;;  %v347_v45 = vmul.f32 %v812_v54, %v346_v31  ;;  %v444_v7 = vand.u32 2147483647, %v815_v62  ;;  %v468_v54 = vsel %vm219_vm3, %v467_v23, 0.0 }
 0x109   :  { %v237_v55 = vadd.f32 1e-12, %v235_v48  ;;  %v238_v56 = vadd.f32 1e-12, %v236_v49  ;;  %v845_v26 = vadd.f32 %v71_v20, %v58_v19  ;;  %v337_v39 = vsub.f32 %v335_v42, %v336_v44 }
 0x10a   :  { %vm445_vm5 = vcmp.lt.f32.partialorder %v444_v7, 0.0004427343  ;;  %vm301_vm6 = vcmask 7168  }
 0x10b   :  { %593 = vrsqrt.f32 %v237_v55  ;;  %vm241_vm11 = vcmp.eq.f32.partialorder %v237_v55, inf  ;;  %v244_v29 = vand.u32 2147483648, %v237_v55  ;;  %vm243_vm12 = vcmp.eq.f32.partialorder %v237_v55, 0.0 }
 0x10c   :  { %595 = vrsqrt.f32 %v238_v56  ;;  %vm248_vm13 = vcmp.eq.f32.partialorder %v238_v56, inf  ;;  %v251_v33 = vand.u32 2147483648, %v238_v56  ;;  %vm250_vm0 = vcmp.eq.f32.partialorder %v238_v56, 0.0 }
 0x10d   :  { %597 = vlog2.f32 %v342_v38  ;;  %v104_v59 = vmul.f32 %v103_v27, %v845_v26  ;;  %v432_v38 = vmul.f32 %v797_v15, %v725_v6  ;;  %v74_v62 = vsel %vm73_vm4, %v845_v26, 0.0 }
 0x10e   :  { %599 = vlog2.f32 %v438_v16 }
 0x10f   :  { %v105_v0 = vsel %vm73_vm4, %v104_v59, 0.0  ;;  %v433_v15 = vsub.f32 %v431_v61, %v432_v38  ;;  %601 = vpow2.f32 %v388_v18 }
 0x115   :  { %v594_v22 = vpop.eup %593 }
 0x116   :  { %v596_v25 = vpop.eup %595  ;;  %v240_v24 = vmul.f32 %v594_v22, %v237_v55 }
 0x117   :  { %v247_v30 = vmul.f32 %v596_v25, %v238_v56  ;;  %v598_v2 = vpop.eup %597 }
 0x118   :  { %v242_v32 = vsel %vm241_vm11, %v237_v55, %v240_v24  ;;  %v344_v53 = vmul.f32 0.6931472, %v598_v2  ;;  %v600_v55 = vpop.eup %599  ;;  %vm513_vm11 = vcmp.eq.s32.totalorder %v782_v63, 4 }
 0x119   :  { %v245_v34 = vsel %vm243_vm12, %v244_v29, %v242_v32  ;;  %v249_v35 = vsel %vm248_vm13, %v238_v56, %v247_v30  ;;  %v440_v8 = vmul.f32 0.6931472, %v600_v55  ;;  %v602_v19 = vpop.eup %601  ;;  %v383_v29 = vmax.f32 %v771_v50, 0.0 }
 0x11a   :  { %v277_v37 = vsel %vm275_vm15, %v245_v34, 0.0  ;;  %v285_v40 = vadd.f32 1000000.0, %v245_v34  ;;  %v252_v41 = vsel %vm250_vm0, %v251_v33, %v249_v35  ;;  %v350_v5 = vsel %vm875_vm2, %v347_v45, %v344_v53 }
 0x11b   :  { %v279_v1 = vsel %vm219_vm3, %v277_v37, -inf  ;;  %v278_v48 = vsel %vm862_vm1, %v252_v41, 0.0  ;;  %v286_v49 = vadd.f32 1000000.0, %v252_v41  ;;  %v351_v12 = vadd.f32 %v350_v5, %v337_v39 }
 0x11c   :  { %280 = vmax.xlane.f32.xlu0 %v279_v1  ;;  %v287_v47 = vsel %vm272_vm8, %v285_v40, %v245_v34  ;;  %v282_v60 = vsel %vm219_vm3, %v278_v48, -inf  ;;  %v446_v13 = vsel %vm445_vm5, %v443_v9, %v440_v8  ;;  %v390_v10 = vadd.f32 1.0, %v602_v19 }
 0x11d   :  { %v289_v56 = vsel %vm219_vm3, %v287_v47, inf  ;;  %v288_v4 = vsel %vm272_vm8, %v286_v49, %v252_v41  ;;  %v352_v51 = vsel %vm301_vm6, %v351_v12, 0.0  ;;  %v447_v14 = vadd.f32 %v446_v13, %v433_v15 }
 0x11e   :  { %290 = vmin.xlane.f32.xlu1 %v289_v56  ;;  %v292_v11 = vsel %vm219_vm3, %v288_v4, inf  ;;  %603 = vlog2.f32 %v390_v10  ;;  %v393_v21 = vmul.f32 -0.5, %v602_v19  ;;  %v396_v27 = vand.u32 2147483647, %v602_v19 }
 0x11f   :  { %v448_v16 = vsel %vm301_vm6, %v447_v14, 0.0  ;;  %v384_v30 = vmul.f32 %v771_v50, %v725_v6  ;;  %vm504_vm8 = vcmp.eq.s32.totalorder %v782_v63, 1  ;;  %vm516_vm12 = vcmp.eq.s32.totalorder %v782_v63, 5 }
 0x120   :  { %283 = vmax.xlane.f32.xlu0 %v282_v60  ;;  %v394_v25 = vadd.f32 1.0, %v393_v21  ;;  %vm397_vm3 = vcmp.lt.f32.partialorder %v396_v27, 0.0004427343  ;;  %vm519_vm13 = vcmp.eq.s32.totalorder %v782_v63, 6 }
 0x121   :  { %v385_v37 = vsub.f32 %v383_v29, %v384_v30 }
 0x122   :  { %469 = vadd.xlane.f32.xlu1 %v468_v54  ;;  %v395_v33 = vmul.f32 %v602_v19, %v394_v25 }
 0x124   :  { %293 = vmin.xlane.f32.xlu0 %v292_v11 }
 0x126   :  { %106 = vadd.xlane.f32.xlu1 %v105_v0 }
 0x128   :  { %75 = vadd.xlane.f32.xlu0 %v74_v62  ;;  %v604_v3 = vpop.eup %603 }
 0x129   :  { %v392_v32 = vmul.f32 0.6931472, %v604_v3 }
 0x12a   :  { %353 = vadd.xlane.f32.xlu1 %v352_v51 }
 0x12b   :  { %v398_v40 = vsel %vm397_vm3, %v395_v33, %v392_v32 }
 0x12c   :  { %v399_v46 = vadd.f32 %v398_v40, %v385_v37 }
 0x12e   :  { %449 = vadd.xlane.f32.xlu1 %v448_v16  ;;  %v400_v48 = vsel %vm301_vm6, %v399_v46, 0.0 }
 0x1a9   :  { %v281_v57 = vpop.xlane.xlu0 %280 }
 0x1ab   :  { %v291_v20 = vpop.xlane.xlu1 %290 }
 0x1ac   :  { %v295_v22 = vsub.f32 %v281_v57, %v291_v20 }
 0x1ad   :  { %v284_v23 = vpop.xlane.xlu0 %283 }
 0x1ae   :  { %v297_v24 = vadd.f32 0.3, %v295_v22 }
 0x1af   :  { %v470_v26 = vpop.xlane.xlu1 %469 }
 0x1b0   :  { %v299_v2 = vmax.f32 %v297_v24, 0.0  ;;  %v471_v35 = vsub.f32 0.0, %v470_v26 }
 0x1b1   :  { %v294_v28 = vpop.xlane.xlu0 %293 }
 0x1b2   :  { %v296_v31 = vsub.f32 %v284_v23, %v294_v28  ;;  %v472_v42 = vsub.f32 1.3540251, %v471_v35  ;;  %v302_v1 = vsel %vm301_vm6, %v299_v2, 0.0 }
 0x1b3   :  { %v107_v41 = vpop.xlane.xlu1 %106 }
 0x1b4   :  { %v298_v34 = vadd.f32 0.3, %v296_v31  ;;  %v108_v44 = vrot.slane %v107_v41, 4  ;;  %v473_v6 = vmax.f32 %v472_v42, 0.0 }
 0x1b5   :  { %v76_v47 = vpop.xlane.xlu0 %75 }
 0x1b6   :  { %v300_v36 = vmax.f32 %v298_v34, 0.0  ;;  %v109_v50 = vadd.f32 %v108_v44, %v107_v41  ;;  %v77_v49 = vrot.slane %v76_v47, 4  ;;  %v474_v53 = vsel %vm301_vm6, %v473_v6, 0.0 }
 0x1b7   :  { %v354_v39 = vpop.xlane.xlu1 %353 }
 0x1b8   :  { %v303_v43 = vsel %vm301_vm6, %v300_v36, 0.0  ;;  %v110_v55 = vrot.slane %v109_v50, 2  ;;  %v78_v56 = vadd.f32 %v77_v49, %v76_v47  ;;  %v355_v4 = vrot.slane %v354_v39, 4 }
 0x1b9   :  { %v304_v45 = vadd.f32 %v303_v43, %v302_v1 }
 0x1ba   :  { %v79_v58 = vrot.slane %v78_v56, 2  ;;  %v111_v54 = vadd.f32 %v110_v55, %v109_v50  ;;  %v356_v8 = vadd.f32 %v355_v4, %v354_v39 }
 0x1bb   :  { %305 = vadd.xlane.f32.xlu0 %v304_v45  ;;  %v450_v5 = vpop.xlane.xlu1 %449 }
 0x1bc   :  { %v80_v7 = vadd.f32 %v79_v58, %v78_v56  ;;  %v112_v60 = vrot.slane %v111_v54, 1  ;;  %v451_v9 = vrot.slane %v450_v5, 4  ;;  %v357_v11 = vrot.slane %v356_v8, 2 }
 0x1be   :  { %v81_v59 = vrot.slane %v80_v7, 1  ;;  %v113_v38 = vadd.f32 %v112_v60, %v111_v54  ;;  %v452_v0 = vadd.f32 %v451_v9, %v450_v5  ;;  %v358_v16 = vadd.f32 %v357_v11, %v356_v8 }
 0x1bf   :  { %401 = vadd.xlane.f32.xlu0 %v400_v48 }
 0x1c0   :  { %v82_v61 = vadd.f32 %v81_v59, %v80_v7  ;;  %v453_v51 = vrot.slane %v452_v0, 2  ;;  %v359_v57 = vrot.slane %v358_v16, 1 }
 0x1c2   :  { %553 = vpush %v82_v61  ;;  %v454_v19 = vadd.f32 %v453_v51, %v452_v0  ;;  %v360_v24 = vadd.f32 %v359_v57, %v358_v16 }
 0x1c3   :  { %475 = vadd.xlane.f32.xlu0 %v474_v53  ;;  %555 = vpush %v113_v38 }
 0x1c4   :  { %v455_v27 = vrot.slane %v454_v19, 1 }
 0x1c6   :  { %v456_v31 = vadd.f32 %v455_v27, %v454_v19 }
 0x1f3   :  { %s554_s10 = spop %553 }
 0x1f4   :  { %s556_s11 = spop %555  ;;  %s86_s30 = smul.f32 0.125, %s554_s10 }
 0x1f5   :  { %s117_s29 = smul.f32 0.125, %s556_s11 }
 0x1f6   :  { %v502_v2 = vstv %s86_s30 }
 0x1f7   :  { %s487_s13 = smul.f32 0.5, %s117_s29  ;;  %v503_v34 = vsel %vm501_vm7, %v502_v2, 0.0  ;;  %v505_v35 = vstv %s117_s29 }
 0x1f8   :  { %v506_v37 = vsel %vm504_vm8, %v505_v35, %v503_v34 }
 0x1f9   :  { %s488_s0 = sadd.f32 %s487_s13, %s86_s30 }
 0x248   :  { %v306_v12 = vpop.xlane.xlu0 %305 }
 0x249   :  { %v307_v15 = vrot.slane %v306_v12, 4 }
 0x24b   :  { %v308_v13 = vadd.f32 %v307_v15, %v306_v12 }
 0x24c   :  { %v402_v14 = vpop.xlane.xlu0 %401 }
 0x24d   :  { %v309_v62 = vrot.slane %v308_v13, 2  ;;  %v403_v17 = vrot.slane %v402_v14, 4 }
 0x24f   :  { %v404_v52 = vadd.f32 %v403_v17, %v402_v14  ;;  %v310_v18 = vadd.f32 %v309_v62, %v308_v13 }
 0x250   :  { %v476_v10 = vpop.xlane.xlu0 %475 }
 0x251   :  { %v405_v20 = vrot.slane %v404_v52, 2  ;;  %v477_v21 = vrot.slane %v476_v10, 4  ;;  %v311_v22 = vrot.slane %v310_v18, 1 }
 0x253   :  { %v478_v23 = vadd.f32 %v477_v21, %v476_v10  ;;  %v312_v25 = vadd.f32 %v311_v22, %v310_v18  ;;  %v406_v3 = vadd.f32 %v405_v20, %v404_v52 }
 0x255   :  { %v479_v28 = vrot.slane %v478_v23, 2  ;;  %557 = vpush %v312_v25  ;;  %v407_v26 = vrot.slane %v406_v3, 1 }
 0x256   :  { %559 = vpush %v360_v24 }
 0x257   :  { %v480_v29 = vadd.f32 %v479_v28, %v478_v23  ;;  %v408_v30 = vadd.f32 %v407_v26, %v406_v3 }
 0x259   :  { %561 = vpush %v408_v30  ;;  %v481_v32 = vrot.slane %v480_v29, 1 }
 0x25a   :  { %563 = vpush %v456_v31 }
 0x25b   :  { %v482_v33 = vadd.f32 %v481_v32, %v480_v29 }
 0x25d   :  { %565 = vpush %v482_v33 }
 0x286   :  { %s558_s14 = spop %557 }
 0x287   :  { %s316_s15 = smul.f32 0.0625, %s558_s14  ;;  %s560_s16 = spop %559 }
 0x288   :  { %s364_s17 = smul.f32 0.125, %s560_s16 }
 0x289   :  { %s489_s18 = smul.f32 0.3, %s316_s15  ;;  %v508_v36 = vstv %s316_s15 }
 0x28a   :  { %s491_s19 = smul.f32 0.2, %s364_s17  ;;  %s562_s20 = spop %561  ;;  %v509_v40 = vsel %vm507_vm9, %v508_v36, %v506_v37  ;;  %v511_v41 = vstv %s364_s17 }
 0x28b   :  { %s490_s21 = sadd.f32 %s489_s18, %s488_s0  ;;  %s412_s22 = smul.f32 0.125, %s562_s20  ;;  %v512_v1 = vsel %vm510_vm10, %v511_v41, %v509_v40 }
 0x28c   :  { %s564_s3 = spop %563 }
 0x28d   :  { %s492_s4 = sadd.f32 %s491_s19, %s490_s21  ;;  %s493_s2 = smul.f32 0.2, %s412_s22  ;;  %v514_v42 = vstv %s412_s22 }
 0x28e   :  { %s460_s1 = smul.f32 0.125, %s564_s3  ;;  %s566_s23 = spop %565  ;;  %v515_v43 = vsel %vm513_vm11, %v514_v42, %v512_v1 }
 0x28f   :  { %s494_s24 = sadd.f32 %s493_s2, %s492_s4  ;;  %s486_s5 = smul.f32 0.125, %s566_s23 }
 0x290   :  { %s495_s25 = smul.f32 0.2, %s460_s1  ;;  %v517_v44 = vstv %s460_s1 }
 0x291   :  { %p497_p8 = scmp.gt.f32.partialorder %s486_s5, 0.0  ;;  %s498_s26 = smul.f32 0.01, %s486_s5  ;;  %v520_v45 = vstv %s486_s5  ;;  %v518_v46 = vsel %vm516_vm12, %v517_v44, %v515_v43 }
 0x292   :  { %s496_s7 = sadd.f32 %s495_s25, %s494_s24  ;;  %v521_v6 = vsel %vm519_vm13, %v520_v45, %v518_v46 }
 0x293   :  { %s939_s26 = smov (!%p497_p8, %s498_s26), 0.0 }
 0x294   :  { %s500_s27 = sadd.f32 %s939_s26, %s496_s7 }
 0x296   :  { %v523_v50 = vstv %s500_s27 }
 0x297   :  { %v524_v47 = vsel %vm522_vm14, %v523_v50, %v521_v6 }
 0x298   :  { %525 = vst [vmem:[%s929_s12] sm:$0x1] %v524_v47 }
 0x299   :  { %530 = vsyncpa [#allocation3], 1 }

</bundles_post_ra>
